<compile_context>
chip_gen: v7x
topology: tpu7x:2x2x1
jax: 0.10.0
libtpu: 0.0.40
codegen_flags: <defaults>
</compile_context>

<pallas_src>
import functools
from math import sqrt

import numpy as np
import jax
import jax.numpy as jnp
from jax.experimental import pallas as pl
from jax.experimental.pallas import tpu as pltpu


VMEM_LIMIT = 32 * 1024 * 1024  # explicit scoped-VMEM cap (safe on v5e/v6e/v7x)


# ----------------------------------------------------------------------------
# Pallas kernels
# ----------------------------------------------------------------------------
def _latent4x4_kernel(z_ref, w_ref, b_ref, g_ref, o_ref, *, cout):
    """ConvTranspose2d(code_dim, C, 4, 1, 0) on a 1x1 latent + PixelNorm + LeakyReLU.

    z_ref: (1, 1, Cin) f32       latent vector for this batch element
    w_ref: (Cin, 16*Cout) bf16   weight, column layout (y*4+x)*Cout + co
    b_ref: (1, 16*Cout) f32      bias tiled over the 16 pixels
    g_ref: (16*Cout, 16) f32     group indicator (pixel membership) for PixelNorm
    o_ref: (1, 1, 16*Cout) f32   lane-dense output
    """
    z = z_ref[0].astype(jnp.bfloat16)                                   # (1, Cin)
    y = jnp.dot(z, w_ref[...], preferred_element_type=jnp.float32)      # (1, 16*Cout)
    y = y + b_ref[...]

    # PixelNorm per output pixel (groups of Cout lanes) without any reshape:
    g = g_ref[...]
    ss = jnp.dot(y * y, g, preferred_element_type=jnp.float32)          # (1, 16)
    scale = jax.lax.rsqrt(ss * (1.0 / cout) + 1e-8)                     # (1, 16)
    scale_full = jax.lax.dot_general(                                   # (1, 16*Cout)
        scale, g, (((1,), (1,)), ((), ())), preferred_element_type=jnp.float32)
    y = y * scale_full
    y = jnp.where(y >= 0.0, y, 0.2 * y)                                 # LeakyReLU(0.2)
    o_ref[0] = y


def _conv3x3_kernel(x_ref, w_ref, b_ref, o_ref, *, H, W, pixel_norm, act):
    """EqualConv2d(Cin, Cout, 3, padding=1) [+ PixelNorm] [+ LeakyReLU], one image.

    x_ref: (1, (H+3)*(W+2), Cin) f32   zero-padded image, rows flattened
    w_ref: (9, Cin, Cout) bf16          tap k = ky*3 + kx
    b_ref: (1, Cout) f32
    o_ref: (1, H*(W+2), Cout) f32       rows h*(W+2)+w ; columns w>=W are discarded
    """
    Wp = W + 2
    M = H * Wp
    cout = w_ref.shape[2]
    acc = jnp.zeros((M, cout), jnp.float32)
    for k in range(9):                         # static unroll: 9 shifted matmuls
        ky, kx = divmod(k, 3)
        start = ky * Wp + kx
        xs = x_ref[0, start:start + M, :].astype(jnp.bfloat16)          # (M, Cin)
        acc = acc + jnp.dot(xs, w_ref[k], preferred_element_type=jnp.float32)
    y = acc + b_ref[...]
    if pixel_norm:
        y = y * jax.lax.rsqrt(jnp.mean(y * y, axis=-1, keepdims=True) + 1e-8)
    if act:
        y = jnp.where(y >= 0.0, y, 0.2 * y)
    o_ref[0] = y


def _to_rgb_kernel(x_ref, w_ref, b_ref, o_ref, *, apply_tanh):
    """EqualConv2d(Cin, 3, 1), computed transposed for a lane-dense (3, N) output.

    x_ref: (1, N, Cin) f32 ; w_ref: (3, Cin) bf16 ; b_ref: (3, 1) f32
    o_ref: (1, 3, N) f32   (reshapes directly to NCHW outside)
    """
    x = x_ref[0].astype(jnp.bfloat16)                                   # (N, Cin)
    y = jax.lax.dot_general(                                            # (3, N)
        w_ref[...], x, (((1,), (1,)), ((), ())), preferred_element_type=jnp.float32)
    y = y + b_ref[...]
    if apply_tanh:
        y = jnp.tanh(y)
    o_ref[0] = y


# ----------------------------------------------------------------------------
# Pallas wrappers
# ----------------------------------------------------------------------------
def latent4x4(z, w, b, g):
    """z: (B, Cin) -> (B, 4, 4, Cout) NHWC."""
    B, cin = z.shape
    n16c = w.shape[1]
    cout = n16c // 16
    z3 = z.reshape(B, 1, cin)
    kernel = functools.partial(_latent4x4_kernel, cout=cout)
    y = pl.pallas_call(
        kernel,
        out_shape=jax.ShapeDtypeStruct((B, 1, n16c), jnp.float32),
        grid=(B,),
        in_specs=[
            pl.BlockSpec((1, 1, cin), lambda i: (i, 0, 0)),
            pl.BlockSpec((cin, n16c), lambda i: (0, 0)),
            pl.BlockSpec((1, n16c), lambda i: (0, 0)),
            pl.BlockSpec((n16c, 16), lambda i: (0, 0)),
        ],
        out_specs=pl.BlockSpec((1, 1, n16c), lambda i: (i, 0, 0)),
        compiler_params=pltpu.CompilerParams(
            dimension_semantics=("parallel",), vmem_limit_bytes=VMEM_LIMIT),
    )(z3, w, b, g)
    return y.reshape(B, 4, 4, cout)


def conv3x3(x, w9, b, *, pixel_norm, act):
    """x: (B, H, W, Cin) NHWC -> (B, H, W, Cout)."""
    B, H, W, C = x.shape
    Wp = W + 2
    M = H * Wp
    Lp = (H + 3) * Wp          # extra bottom row keeps every tap slice in bounds
    cout = w9.shape[2]
    xp = jnp.pad(x, ((0, 0), (1, 2), (1, 1), (0, 0)))
    xflat = xp.reshape(B, Lp, C)
    kernel = functools.partial(_conv3x3_kernel, H=H, W=W,
                               pixel_norm=pixel_norm, act=act)
    y = pl.pallas_call(
        kernel,
        out_shape=jax.ShapeDtypeStruct((B, M, cout), jnp.float32),
        grid=(B,),
        in_specs=[
            pl.BlockSpec((1, Lp, C), lambda i: (i, 0, 0)),
            pl.BlockSpec((9, C, cout), lambda i: (0, 0, 0)),
            pl.BlockSpec((1, cout), lambda i: (0, 0)),
        ],
        out_specs=pl.BlockSpec((1, M, cout), lambda i: (i, 0, 0)),
        compiler_params=pltpu.CompilerParams(
            dimension_semantics=("parallel",), vmem_limit_bytes=VMEM_LIMIT),
    )(xflat, w9, b)
    # drop the 2 garbage columns introduced by the row-flattened formulation
    return y.reshape(B, H, Wp, cout)[:, :, :W, :]


def to_rgb(x, w, b, *, apply_tanh=False):
    """x: (B, H, W, Cin) NHWC -> (B, 3, H, W) NCHW."""
    B, H, W, C = x.shape
    N = H * W
    xr = x.reshape(B, N, C)
    kernel = functools.partial(_to_rgb_kernel, apply_tanh=apply_tanh)
    y = pl.pallas_call(
        kernel,
        out_shape=jax.ShapeDtypeStruct((B, 3, N), jnp.float32),
        grid=(B,),
        in_specs=[
            pl.BlockSpec((1, N, C), lambda i: (i, 0, 0)),
            pl.BlockSpec((3, C), lambda i: (0, 0)),
            pl.BlockSpec((3, 1), lambda i: (0, 0)),
        ],
        out_specs=pl.BlockSpec((1, 3, N), lambda i: (i, 0, 0)),
        compiler_params=pltpu.CompilerParams(
            dimension_semantics=("parallel",), vmem_limit_bytes=VMEM_LIMIT),
    )(xr, w, b)
    return y.reshape(B, 3, H, W)


# ----------------------------------------------------------------------------
# Plain-JAX glue: bilinear 2x upsampling (align_corners=False, PyTorch semantics)
# TODO(synk): upsample kept as plain-JAX einsums; could be folded into the conv kernels.
# ----------------------------------------------------------------------------
def _bilinear_matrix(n):
    m = np.zeros((2 * n, n), dtype=np.float32)
    for i in range(2 * n):
        src = (i + 0.5) / 2.0 - 0.5
        src = max(src, 0.0)
        i0 = int(np.floor(src))
        i1 = min(i0 + 1, n - 1)
        frac = src - i0
        m[i, i0] += 1.0 - frac
        m[i, i1] += frac
    return jnp.asarray(m)


def upscale2x_nhwc(x):
    B, H, W, C = x.shape
    mh, mw = _bilinear_matrix(H), _bilinear_matrix(W)
    y = jnp.einsum('ph,bhwc->bpwc', mh, x)
    return jnp.einsum('qw,bpwc->bpqc', mw, y)


def upscale2x_nchw(x):
    B, C, H, W = x.shape
    mh, mw = _bilinear_matrix(H), _bilinear_matrix(W)
    y = jnp.einsum('ph,bchw->bcpw', mh, x)
    return jnp.einsum('qw,bcpw->bcpq', mw, y)


# ----------------------------------------------------------------------------
# Parameter construction (deterministic; EqualLR scale folded into bf16 weights)
# ----------------------------------------------------------------------------
def make_latent_params(key, cin, cout):
    # torch ConvTranspose2d weight: (cin, cout, 4, 4); EqualLR fan_in = cout * 16
    w = jax.random.normal(key, (cin, cout, 4, 4), jnp.float32) * sqrt(2.0 / (cout * 16))
    w = jnp.transpose(w, (0, 2, 3, 1)).reshape(cin, 16 * cout)   # [ci, (y*4+x)*co]
    return w.astype(jnp.bfloat16), jnp.zeros((1, 16 * cout), jnp.float32)


def make_conv3x3_params(key, cin, cout):
    # torch Conv2d weight: (cout, cin, 3, 3); EqualLR fan_in = cin * 9
    w = jax.random.normal(key, (cout, cin, 3, 3), jnp.float32) * sqrt(2.0 / (cin * 9))
    w = jnp.transpose(w, (2, 3, 1, 0)).reshape(9, cin, cout)     # [ky*3+kx, ci, co]
    return w.astype(jnp.bfloat16), jnp.zeros((1, cout), jnp.float32)


def make_rgb_params(key, cin, cout=3):
    # torch Conv2d weight: (cout, cin, 1, 1); EqualLR fan_in = cin
    w = jax.random.normal(key, (cout, cin, 1, 1), jnp.float32) * sqrt(2.0 / cin)
    return w.reshape(cout, cin).astype(jnp.bfloat16), jnp.zeros((cout, 1), jnp.float32)


def make_group_matrix(cout):
    g = np.zeros((16 * cout, 16), np.float32)
    for p in range(16):
        g[p * cout:(p + 1) * cout, p] = 1.0
    return jnp.asarray(g)


def init_params(key, code_dim, in_ch):
    ks = jax.random.split(key, 12)
    params = {
        'ct':    make_latent_params(ks[0], code_dim, in_ch),
        'p4':    make_conv3x3_params(ks[1], in_ch, in_ch),
        'p8a':   make_conv3x3_params(ks[2], in_ch, in_ch),
        'p8b':   make_conv3x3_params(ks[3], in_ch, in_ch),
        'p16a':  make_conv3x3_params(ks[4], in_ch, in_ch),
        'p16b':  make_conv3x3_params(ks[5], in_ch, in_ch),
        'p32a':  make_conv3x3_params(ks[6], in_ch, in_ch),
        'p32b':  make_conv3x3_params(ks[7], in_ch, in_ch),
        'rgb4':  make_rgb_params(ks[8], in_ch),
        'rgb8':  make_rgb_params(ks[9], in_ch),
        'rgb16': make_rgb_params(ks[10], in_ch),
        'rgb32': make_rgb_params(ks[11], in_ch),
        'g':     make_group_matrix(in_ch),
    }
    return params


# ----------------------------------------------------------------------------
# Forward pass (mirrors CorrectGenerator.forward)
# ----------------------------------------------------------------------------
def correct_generator_forward(z, params, *, step=2, alpha=-1.0,
                              pixel_norm=True, tanh=False, max_step=4):
    if step > max_step:
        step = max_step

    # progression_4: ConvT(4x4) + PixelNorm + LReLU, then Conv3x3 + PixelNorm + LReLU
    out4 = latent4x4(z, *params['ct'], params['g'])
    out4 = conv3x3(out4, *params['p4'], pixel_norm=True, act=True)

    def rgb(feat, name, fuse_tanh=False):
        return to_rgb(feat, *params[name], apply_tanh=fuse_tanh)

    def output(feat_small, feat_big, name_small, name_big):
        if 0 <= alpha < 1:
            skip = upscale2x_nchw(rgb(feat_small, name_small))
            out = (1.0 - alpha) * skip + alpha * rgb(feat_big, name_big)
            return jnp.tanh(out) if tanh else out
        return rgb(feat_big, name_big, fuse_tanh=tanh)  # no blend: fuse tanh in-kernel

    def block(x, name_a, name_b):
        x = conv3x3(x, *params[name_a], pixel_norm=pixel_norm, act=True)
        x = conv3x3(x, *params[name_b], pixel_norm=pixel_norm, act=True)
        return x

    if step == 1:
        return rgb(out4, 'rgb4', fuse_tanh=tanh)

    out8 = block(upscale2x_nhwc(out4), 'p8a', 'p8b')
    if step == 2:
        if tanh:  # reproduces the PyTorch quirk: tanh branch at step 2 skips blending
            return rgb(out8, 'rgb8', fuse_tanh=True)
        return output(out4, out8, 'rgb4', 'rgb8')

    out16 = block(upscale2x_nhwc(out8), 'p16a', 'p16b')
    if step == 3:
        return output(out8, out16, 'rgb8', 'rgb16')

    out32 = block(upscale2x_nhwc(out16), 'p32a', 'p32b')
    if step == 4:
        return output(out16, out32, 'rgb16', 'rgb32')

    return None  # step <= 0: PyTorch forward falls through and returns None


# ----------------------------------------------------------------------------
if __name__ == "__main__":
    key = jax.random.PRNGKey(0)
    code_dim, in_ch, batch = 32, 32, 2        # small synthetic config
    k_z, k_p = jax.random.split(key)

    z = jax.random.normal(k_z, (batch, code_dim), jnp.float32)  # latent (B, code_dim)
    params = init_params(k_p, code_dim, in_ch)

    out = correct_generator_forward(z, params, step=2, alpha=0.5,
                                    pixel_norm=True, tanh=False)
    out = jax.block_until_ready(out)
    assert out.shape == (batch, 3, 8, 8), out.shape
    assert bool(jnp.all(jnp.isfinite(out)))
    print("KERNEL_OK")
</pallas_src>

<mosaic_0001>
module attributes {stable_mosaic.version = 11 : i64} {
  func.func @_latent4x4_kernel(%arg0: i32, %arg1: memref<1x1x32xf32, #tpu.memory_space<vmem>>, %arg2: memref<32x512xbf16, #tpu.memory_space<vmem>>, %arg3: memref<1x512xf32, #tpu.memory_space<vmem>>, %arg4: memref<512x16xf32, #tpu.memory_space<vmem>>, %arg5: memref<1x1x512xf32, #tpu.memory_space<vmem>>) attributes {dimension_semantics = [#tpu.dimension_semantics<parallel>], iteration_bounds = array<i64: 2>, scalar_prefetch = 0 : i64, scratch_operands = 0 : i64, tpu.core_type = #tpu.core_type<tc>, window_params = [{transform_indices = @transform_0, window_bounds = array<i64: 1, 1, 32>}, {pipeline_mode = #tpu.pipeline_mode<synchronous>, transform_indices = @transform_1, window_bounds = array<i64: 32, 512>}, {pipeline_mode = #tpu.pipeline_mode<synchronous>, transform_indices = @transform_2, window_bounds = array<i64: 1, 512>}, {pipeline_mode = #tpu.pipeline_mode<synchronous>, transform_indices = @transform_3, window_bounds = array<i64: 512, 16>}, {transform_indices = @transform_4, window_bounds = array<i64: 1, 1, 512>}]} {
    %c0 = arith.constant 0 : index
    %c0_0 = arith.constant 0 : index
    %c0_1 = arith.constant 0 : index
    %0 = vector.load %arg1[%c0, %c0_0, %c0_1] : memref<1x1x32xf32, #tpu.memory_space<vmem>>, vector<1x1x32xf32>
    %1 = vector.shape_cast %0 : vector<1x1x32xf32> to vector<1x32xf32>
    %2 = arith.truncf %1 : vector<1x32xf32> to vector<1x32xbf16>
    %c0_2 = arith.constant 0 : index
    %c0_3 = arith.constant 0 : index
    %3 = vector.load %arg2[%c0_2, %c0_3] : memref<32x512xbf16, #tpu.memory_space<vmem>>, vector<32x512xbf16>
    %cst = arith.constant dense<0.000000e+00> : vector<1x512xf32>
    %4 = tpu.matmul %2, %3, %cst {dimension_numbers = #tpu.dot_dimension_numbers<[1], [0], [0], [1], [0, 0, 1, 1], [], []>} : vector<1x32xbf16>, vector<32x512xbf16>, vector<1x512xf32> -> vector<1x512xf32>
    %c0_4 = arith.constant 0 : index
    %c0_5 = arith.constant 0 : index
    %5 = vector.load %arg3[%c0_4, %c0_5] : memref<1x512xf32, #tpu.memory_space<vmem>>, vector<1x512xf32>
    %6 = arith.addf %4, %5 : vector<1x512xf32>
    %c0_6 = arith.constant 0 : index
    %c0_7 = arith.constant 0 : index
    %7 = vector.load %arg4[%c0_6, %c0_7] : memref<512x16xf32, #tpu.memory_space<vmem>>, vector<512x16xf32>
    %8 = arith.mulf %6, %6 : vector<1x512xf32>
    %cst_8 = arith.constant dense<0.000000e+00> : vector<1x16xf32>
    %9 = tpu.matmul %8, %7, %cst_8 {dimension_numbers = #tpu.dot_dimension_numbers<[1], [0], [0], [1], [0, 0, 1, 1], [], []>} : vector<1x512xf32>, vector<512x16xf32>, vector<1x16xf32> -> vector<1x16xf32>
    %cst_9 = arith.constant 3.125000e-02 : f32
    %10 = vector.broadcast %cst_9 : f32 to vector<1x16xf32>
    %11 = arith.mulf %9, %10 : vector<1x16xf32>
    %cst_10 = arith.constant 9.99999993E-9 : f32
    %12 = vector.broadcast %cst_10 : f32 to vector<1x16xf32>
    %13 = arith.addf %11, %12 : vector<1x16xf32>
    %14 = math.rsqrt %13 : vector<1x16xf32>
    %cst_11 = arith.constant dense<0.000000e+00> : vector<1x512xf32>
    %15 = tpu.matmul %14, %7, %cst_11 {dimension_numbers = #tpu.dot_dimension_numbers<[1], [1], [0], [0], [0, 0, 1, 0], [], []>} : vector<1x16xf32>, vector<512x16xf32>, vector<1x512xf32> -> vector<1x512xf32>
    %16 = arith.mulf %6, %15 : vector<1x512xf32>
    %cst_12 = arith.constant 0.000000e+00 : f32
    %17 = vector.broadcast %cst_12 : f32 to vector<1x512xf32>
    %18 = arith.cmpf oge, %16, %17 : vector<1x512xf32>
    %cst_13 = arith.constant 2.000000e-01 : f32
    %19 = vector.broadcast %cst_13 : f32 to vector<1x512xf32>
    %20 = arith.mulf %19, %16 : vector<1x512xf32>
    %21 = arith.select %18, %16, %20 : vector<1x512xi1>, vector<1x512xf32>
    %c0_14 = arith.constant 0 : index
    %c0_15 = arith.constant 0 : index
    %c0_16 = arith.constant 0 : index
    %22 = vector.load %arg5[%c0_14, %c0_15, %c0_16] : memref<1x1x512xf32, #tpu.memory_space<vmem>>, vector<1x1x512xf32>
    %23 = vector.shape_cast %22 : vector<1x1x512xf32> to vector<1x512xf32>
    %24 = vector.shape_cast %21 : vector<1x512xf32> to vector<1x1x512xf32>
    tpu.vector_store %arg5[%c0_14, %c0_15, %c0_16], %24 {strides = array<i32>} : memref<1x1x512xf32, #tpu.memory_space<vmem>>, vector<1x1x512xf32>,
    return
  }
  func.func @transform_0(%arg0: i32) -> (i32, i32, i32) {
    %c0_i32 = arith.constant 0 : i32
    %c0_i32_0 = arith.constant 0 : i32
    %c0_i32_1 = arith.constant 0 : i32
    return %arg0, %c0_i32, %c0_i32_0 : i32, i32, i32
  }
  func.func @transform_1(%arg0: i32) -> (i32, i32) {
    %c0_i32 = arith.constant 0 : i32
    %c0_i32_0 = arith.constant 0 : i32
    %c0_i32_1 = arith.constant 0 : i32
    return %c0_i32, %c0_i32_0 : i32, i32
  }
  func.func @transform_2(%arg0: i32) -> (i32, i32) {
    %c0_i32 = arith.constant 0 : i32
    %c0_i32_0 = arith.constant 0 : i32
    %c0_i32_1 = arith.constant 0 : i32
    return %c0_i32, %c0_i32_0 : i32, i32
  }
  func.func @transform_3(%arg0: i32) -> (i32, i32) {
    %c0_i32 = arith.constant 0 : i32
    %c0_i32_0 = arith.constant 0 : i32
    %c0_i32_1 = arith.constant 0 : i32
    return %c0_i32, %c0_i32_0 : i32, i32
  }
  func.func @transform_4(%arg0: i32) -> (i32, i32, i32) {
    %c0_i32 = arith.constant 0 : i32
    %c0_i32_0 = arith.constant 0 : i32
    %c0_i32_1 = arith.constant 0 : i32
    return %arg0, %c0_i32, %c0_i32_0 : i32, i32, i32
  }
}

</mosaic_0001>

<bundles_post_ra>
// kernel: tpu_custom_call.1
= control target key start
LH: loop header
LB: loop body
LE: loop exit
PB: predicated region body
PF: predicated region fallthrough
CT: control target
= control target key end

     0   :  { %9 = vsyncpa [#allocation3], 0  ;;  %s2107_s0 = inlined_call_operand.vmem [shape: f32[2,1,32], index: 0, kind: input, shape index: {}]   ;;  %s2108_s1 = inlined_call_operand.vmem [shape: bf16[32,512], index: 1, kind: input, shape index: {}]   ;;  %s2109_s2 = inlined_call_operand.vmem [shape: f32[1,512], index: 2, kind: input, shape index: {}]   ;;  %s2110_s3 = inlined_call_operand.vmem [shape: f32[512,16], index: 3, kind: input, shape index: {}]   ;;  %s2111_s4 = inlined_call_operand.hbm [shape: f32[2,1,512], index: 4, kind: output, shape index: {}]  }
   0x1   :  { %11 = vsyncpa [#allocation3 + $0x1], 0  ;;  %s1551_s15 = smov 0   ;;  %s1553_s16 = smov 0  }
   0x2   :  { %s1555_s17 = smov 0   ;;  %s1557_s18 = smov 0  }
   0x3 LB: > { %s1572_s19 = sadd.s32 4294967295, %s1521_s18   ;;  %s1019_s20 = sadd.s32 4294967294, %s1521_s18   ;;  %s1521_s18 = sphi %s1557_s18, %s2119_s18   ;;  %s1517_s17 = sphi %s1555_s17, %s2118_s17   ;;  %s1513_s16 = sphi %s1553_s16, %s2117_s16   ;;  %s1509_s15 = sphi %s1551_s15, %s2116_s15  }
   0x4   : > { %s1576_s21 = sadd.s32 1, %s1521_s18   ;;  %s113_s22 = sadd.s32 1, %s1517_s17 }
   0x5   : > { %s110_s23 = ssub.s32 %s1521_s18, %s1576_s21  ;;  %p123_p0 = scmp.ne.s32.totalorder %s1517_s17, %s1513_s16 }
   0x6   : > { %p111_p1 = scmp.eq.s32.totalorder %s110_s23, 0  ;;  %p124_p2 = scmp.eq.s32.totalorder %s1572_s19, 1 }
   0x7   : > { %p129_p3 = scmp.ne.s32.totalorder %s1513_s16, %s1509_s15  ;;  %p130_p4 = scmp.eq.s32.totalorder %s1019_s20, 1 }
   0x8   : > { %s1587_s24 = scalar_select %p111_p1, %s1517_s17, %s113_s22  }
   0x9   : > { %p1589_p5 = por %p124_p2, %p123_p0  ;;  %p1593_p6 = por %p130_p4, %p129_p3 }
   0xa   : > { %p1022_p7 = scmp.ge.s32.totalorder %s1521_s18, 1  ;;  %p163_p8 = scmp.lt.s32.totalorder %s1521_s18, 3 }
   0xc   : > { %p164_p9 = pnand %p1022_p7, %p163_p8 }
   0xd   : > { %v1445_v0 = vld [vmem:[%s2108_s1 + $0x4] ss:$16 sps:$4 sm:$0xff] (!%p164_p9)   ;;  %p187_p10 = scmp.lt.s32.totalorder (!%p164_p9), %s1572_s19, 1  ;;  %v1447_v1 = vld [vmem:[%s2108_s1 + $0xc] ss:$16 sps:$4 sm:$0xff] (!%p164_p9)   ;;  %v1523_v2 = vmov (!%p164_p9), 0  }
   0xe   : > { %167 = sbr.rel (%p164_p9) target bundleno = 718 (0x2ce), region = 36  ;;  %299 = vmatprep.mubr.bf16.mxu0 (!%p164_p9), %v1523_v2  ;;  %340 = vmatprep.mubr.bf16.mxu1 (!%p164_p9), %v1523_v2  ;;  %v1449_v3 = vld [vmem:[%s2108_s1] ss:$16 sps:$4 sm:$0xff] (!%p164_p9)   ;;  %v1450_v4 = vld [vmem:[%s2108_s1 + $0x8] ss:$16 sps:$4 sm:$0xff] (!%p164_p9)   ;;  %vm263_vm0 = vcmask (!%p164_p9), 261120  }
   0xf   : > { %267 = vmatprep.subr.bf16.mxu0 (!%p164_p9), %v1445_v0  ;;  %308 = vmatprep.subr.bf16.mxu1 (!%p164_p9), %v1447_v1  ;;  %v1451_v5 = vld [vmem:[%s2108_s1 + $0x24] ss:$16 sps:$4 sm:$0xff] (!%p164_p9)   ;;  %v1453_v6 = vld [vmem:[%s2108_s1 + $0x2c] ss:$16 sps:$4 sm:$0xff] (!%p164_p9)   ;;  %v1455_v7 = vld [vmem:[%s2108_s1 + $0x20] ss:$16 sps:$4 sm:$0xff] (!%p164_p9)  }
  0x10   : > { %268 = vmatpush1.bf16.msra.mxu0 (!%p164_p9), %v1449_v3  ;;  %309 = vmatpush1.bf16.msra.mxu1 (!%p164_p9), %v1450_v4  ;;  %v1456_v8 = vld [vmem:[%s2108_s1 + $0x28] ss:$16 sps:$4 sm:$0xff] (!%p164_p9)   ;;  %v365_v10 = vld [vmem:[%s2110_s3 + $0x80] sm:$0xff] (!%p164_p9)  ;;  %v367_v22 = vld [vmem:[%s2110_s3 + $0x90] sm:$0xff] (!%p164_p9)  ;;  %vm560_vm1 = vcmask (!%p164_p9), 130048   ;;  %s184_s20 = sand.u32 (!%p164_p9), 1, %s1513_s16  }
  0x11   : > { %269 = vmatprep.subr.bf16.mxu0 (!%p164_p9), %v1451_v5  ;;  %310 = vmatprep.subr.bf16.mxu1 (!%p164_p9), %v1453_v6  ;;  %v366_v11 = vld [vmem:[%s2110_s3 + $0x88] sm:$0xff] (!%p164_p9)  ;;  %v397_v12 = vld [vmem:[%s2110_s3 + $0x180] sm:$0xff] (!%p164_p9)  ;;  %v368_v23 = vld [vmem:[%s2110_s3 + $0x98] sm:$0xff] (!%p164_p9)  ;;  %s1023_s22 = sshll.u32 (!%p164_p9), %s184_s20, 2  ;;  %s1105_s23 = sshll.u32 (!%p164_p9), %s1572_s19, 6 }
  0x12   : > { %v398_v13 = vld [vmem:[%s2110_s3 + $0x188] sm:$0xff] (!%p164_p9)  ;;  %v1640_v15 = vpack.c.bf16 (!%p164_p9), %v366_v11, %v365_v10  ;;  %v349_v17 = vld [vmem:[%s2110_s3] sm:$0xff] (!%p164_p9)  ;;  %v1668_v25 = vpack.c.bf16 (!%p164_p9), %v368_v23, %v367_v22  ;;  %v399_v26 = vld [vmem:[%s2110_s3 + $0x190] sm:$0xff] (!%p164_p9)  ;;  %s2063_s5 = scalar_lea.hbm (!%p164_p9), %s2111_s4, %s1105_s23  ;;  %s949_s6 = scalar_lea.sflag (!%p164_p9), [#allocation3], %s184_s20 }
  0x13   : > { %v1642_v16 = vpack.c.bf16 (!%p164_p9), %v398_v13, %v397_v12  ;;  %v350_v18 = vld [vmem:[%s2110_s3 + $0x8] sm:$0xff] (!%p164_p9)  ;;  %v381_v19 = vld [vmem:[%s2110_s3 + $0x100] sm:$0xff] (!%p164_p9)  ;;  %v400_v27 = vld [vmem:[%s2110_s3 + $0x198] sm:$0xff] (!%p164_p9)  ;;  %s1525_s7 = smov (!%p164_p9), [#allocation2]  }
  0x14   : > { %270 = vmatpush1.bf16.msra.mxu0 (!%p164_p9), %v1455_v7  ;;  %311 = vmatpush1.bf16.msra.mxu1 (!%p164_p9), %v1456_v8  ;;  %v1653_v20 = vpack.c.bf16 (!%p164_p9), %v350_v18, %v349_v17  ;;  %v382_v21 = vld [vmem:[%s2110_s3 + $0x108] sm:$0xff] (!%p164_p9)  ;;  %v351_v28 = vld [vmem:[%s2110_s3 + $0x10] sm:$0xff] (!%p164_p9)  ;;  %v1679_v29 = vpack.c.bf16 (!%p164_p9), %v400_v27, %v399_v26  ;;  %v352_v30 = vld [vmem:[%s2110_s3 + $0x18] sm:$0xff] (!%p164_p9)  ;;  %s1463_s8 = sshll.u32 (!%p164_p9), %s1525_s7, 4  ;;  %s1464_s8 = int_to_ptr.vmem [resolvable:$false] %s1463_s8 }
  0x15   : > { %s188_s9 = scalar_select %p187_p10, %s1572_s19, 1  ;;  %1245 = vmatprep.subr.bf16.mxu0 %v1640_v15  ;;  %1277 = vmatprep.subr.bf16.mxu1 %v1642_v16  ;;  %v1666_v24 = vpack.c.bf16 %v382_v21, %v381_v19  ;;  %v383_v31 = vld [vmem:[%s2110_s3 + $0x110] sm:$0xff]  ;;  %v384_v32 = vld [vmem:[%s2110_s3 + $0x118] sm:$0xff]  ;;  %v369_v33 = vld [vmem:[%s2110_s3 + $0xa0] sm:$0xff]  ;;  %v1703_v36 = vpack.c.bf16 %v352_v30, %v351_v28 }
  0x16   : > { %v370_v34 = vld [vmem:[%s2110_s3 + $0xa8] sm:$0xff]  ;;  %v401_v35 = vld [vmem:[%s2110_s3 + $0x1a0] sm:$0xff]  ;;  %v1705_v37 = vpack.c.bf16 %v384_v32, %v383_v31  ;;  %v371_v45 = vld [vmem:[%s2110_s3 + $0xb0] sm:$0xff]  ;;  %s1465_s10 = scalar_lea.vmem %s1464_s8, 128 }
  0x17   : > { %s189_s27 = scalar_lea.vmem %s2107_s0, %s188_s9  ;;  %v402_v38 = vld [vmem:[%s2110_s3 + $0x1a8] sm:$0xff]  ;;  %v353_v39 = vld [vmem:[%s2110_s3 + $0x20] sm:$0xff]  ;;  %v1718_v41 = vpack.c.bf16 %v370_v34, %v369_v33  ;;  %v372_v46 = vld [vmem:[%s2110_s3 + $0xb8] sm:$0xff] }
  0x18   : > { %v191_v9 = vld [vmem:[%s189_s27] sm:$0x1]  ;;  %v354_v40 = vld [vmem:[%s2110_s3 + $0x28] sm:$0xff]  ;;  %v1720_v42 = vpack.c.bf16 %v402_v38, %v401_v35  ;;  %v403_v47 = vld [vmem:[%s2110_s3 + $0x1b0] sm:$0xff]  ;;  %v1754_v53 = vpack.c.bf16 %v372_v46, %v371_v45  ;;  %s186_s27 = scalar_lea.vmem [#allocation2], %s1023_s22 }
  0x19   : > { %v192_v14 = vpack.c.bf16 %v191_v9, %v191_v9  ;;  %v385_v43 = vld [vmem:[%s2110_s3 + $0x120] sm:$0xff]  ;;  %v386_v44 = vld [vmem:[%s2110_s3 + $0x128] sm:$0xff]  ;;  %v404_v48 = vld [vmem:[%s2110_s3 + $0x1b8] sm:$0xff]  ;;  %v1742_v49 = vpack.c.bf16 %v354_v40, %v353_v39  ;;  %s963_s28 = sshll.u32 %s186_s27, 4  ;;  %s2065_s28 = int_to_ptr.vmem [resolvable:$true] %s963_s28 }
  0x1a   : > { %v1744_v50 = vpack.c.bf16 %v386_v44, %v385_v43  ;;  %v355_v51 = vld [vmem:[%s2110_s3 + $0x30] sm:$0xff]  ;;  %v356_v52 = vld [vmem:[%s2110_s3 + $0x38] sm:$0xff]  ;;  %v1756_v54 = vpack.c.bf16 %v404_v48, %v403_v47  ;;  %v373_v57 = vld [vmem:[%s2110_s3 + $0xc0] sm:$0xff]  ;;  %s1459_s19 = scalar_lea.vmem %s2065_s28, 64  ;;  %p1466_p0 = scmp.lt.s32.totalorder %s2065_s28, %s1464_s8 }
  0x1b   : > { %1032 = vmatmul.mubr.msk.bf16.vlgmr.msra.gmra.mrb[0].mxu0 %vm263_vm0, %v192_v14  ;;  %1033 = vmatmul.mubr.msk.bf16.vlgmr.msra.gmra.mrb[0].mxu1 %vm263_vm0, %v192_v14  ;;  %v387_v55 = vld [vmem:[%s2110_s3 + $0x130] sm:$0xff]  ;;  %v388_v56 = vld [vmem:[%s2110_s3 + $0x138] sm:$0xff]  ;;  %v374_v58 = vld [vmem:[%s2110_s3 + $0xc8] sm:$0xff]  ;;  %v1778_v61 = vpack.c.bf16 %v356_v52, %v355_v51  ;;  %p1460_p11 = scmp.ne.s32.totalorder %s2065_s28, %s1459_s19  ;;  %p1467_p1 = scmp.lt.s32.totalorder %s1465_s10, %s1459_s19 }
  0x1c   : > { %1247 = vmatpush3.bf16.msra.mxu0 %v1653_v20  ;;  %1279 = vmatpush3.bf16.msra.mxu1 %v1666_v24  ;;  %v405_v59 = vld [vmem:[%s2110_s3 + $0x1c0] sm:$0xff]  ;;  %v406_v60 = vld [vmem:[%s2110_s3 + $0x1c8] sm:$0xff]  ;;  %v1780_v62 = vpack.c.bf16 %v388_v56, %v387_v55  ;;  %v1790_v1 = vpack.c.bf16 %v374_v58, %v373_v57  ;;  %v375_v5 = vld [vmem:[%s2110_s3 + $0xd0] sm:$0xff]  ;;  %v243_v58 = vlaneseq }
  0x1d   : > { %1249 = vmatprep.subr.bf16.mxu0 %v1668_v25  ;;  %1281 = vmatprep.subr.bf16.mxu1 %v1679_v29  ;;  %v357_v63 = vld [vmem:[%s2110_s3 + $0x40] sm:$0xff]  ;;  %v358_v0 = vld [vmem:[%s2110_s3 + $0x48] sm:$0xff]  ;;  %v1792_v2 = vpack.c.bf16 %v406_v60, %v405_v59  ;;  %v376_v6 = vld [vmem:[%s2110_s3 + $0xd8] sm:$0xff]  ;;  %p1461_p12 = pnand %p1460_p11, %p1589_p5  ;;  %p1468_p2 = por %p1467_p1, %p1466_p0 }
  0x1e   : > { %v389_v3 = vld [vmem:[%s2110_s3 + $0x140] sm:$0xff]  ;;  %v390_v4 = vld [vmem:[%s2110_s3 + $0x148] sm:$0xff]  ;;  %v407_v7 = vld [vmem:[%s2110_s3 + $0x1d0] sm:$0xff]  ;;  %v1814_v9 = vpack.c.bf16 %v358_v0, %v357_v63  ;;  %v1826_v13 = vpack.c.bf16 %v376_v6, %v375_v5  ;;  %v1931_v59 = vshrl.u32 %v243_v58, 7  ;;  %vm945_vm7 = vcmp.lt.s32.totalorder %v243_v58, 512 }
  0x1f   : > { %v408_v8 = vld [vmem:[%s2110_s3 + $0x1d8] sm:$0xff]  ;;  %v1816_v10 = vpack.c.bf16 %v390_v4, %v389_v3  ;;  %v359_v11 = vld [vmem:[%s2110_s3 + $0x50] sm:$0xff]  ;;  %v377_v19 = vld [vmem:[%s2110_s3 + $0xe0] sm:$0xff]  ;;  %p1462_p13 = pneg %p1461_p12 }
  0x20   : > { %1251 = vmatpush3.bf16.msra.mxu0 %v1703_v36  ;;  %1283 = vmatpush3.bf16.msra.mxu1 %v1705_v37  ;;  %v360_v12 = vld [vmem:[%s2110_s3 + $0x58] sm:$0xff]  ;;  %v1828_v14 = vpack.c.bf16 %v408_v8, %v407_v7  ;;  %v391_v17 = vld [vmem:[%s2110_s3 + $0x150] sm:$0xff]  ;;  %v378_v21 = vld [vmem:[%s2110_s3 + $0xe8] sm:$0xff]  ;;  %v245_v60 = vsub.s32 0, %v1931_v59  ;;  %v253_v63 = vsub.s32 2, %v1931_v59  ;;  %v249_v3 = vsub.s32 1, %v1931_v59 }
  0x21   : > { %1253 = vmatprep.subr.bf16.mxu0 %v1718_v41  ;;  %1285 = vmatprep.subr.bf16.mxu1 %v1720_v42  ;;  %v392_v18 = vld [vmem:[%s2110_s3 + $0x158] sm:$0xff]  ;;  %v409_v22 = vld [vmem:[%s2110_s3 + $0x1e0] sm:$0xff]  ;;  %v410_v23 = vld [vmem:[%s2110_s3 + $0x1e8] sm:$0xff]  ;;  %v1850_v26 = vpack.c.bf16 %v360_v12, %v359_v11  ;;  %v1856_v28 = vpack.c.bf16 %v378_v21, %v377_v19  ;;  %p1469_p3 = pnand %p1468_p2, %p1462_p13 }
  0x22   : > { %v1852_v27 = vpack.c.bf16 %v392_v18, %v391_v17  ;;  %v1858_v30 = vpack.c.bf16 %v410_v23, %v409_v22  ;;  %v361_v31 = vld [vmem:[%s2110_s3 + $0x60] sm:$0xff]  ;;  %v362_v32 = vld [vmem:[%s2110_s3 + $0x68] sm:$0xff]  ;;  %v379_v39 = vld [vmem:[%s2110_s3 + $0xf0] sm:$0xff] }
  0x23   : > { %v393_v33 = vld [vmem:[%s2110_s3 + $0x160] sm:$0xff]  ;;  %v1873_v34 = vpack.c.bf16 %v362_v32, %v361_v31  ;;  %v394_v35 = vld [vmem:[%s2110_s3 + $0x168] sm:$0xff]  ;;  %v380_v40 = vld [vmem:[%s2110_s3 + $0xf8] sm:$0xff] }
  0x24   : > { %1255 = vmatpush3.bf16.msra.mxu0 %v1742_v49  ;;  %1287 = vmatpush3.bf16.msra.mxu1 %v1744_v50  ;;  %v1878_v38 = vpack.c.bf16 %v394_v35, %v393_v33  ;;  %v411_v43 = vld [vmem:[%s2110_s3 + $0x1f0] sm:$0xff]  ;;  %v1891_v44 = vpack.c.bf16 %v380_v40, %v379_v39  ;;  %v412_v45 = vld [vmem:[%s2110_s3 + $0x1f8] sm:$0xff]  ;;  %vm1920_vm2 = vmpackc.low %vm560_vm1, %vm560_vm1 }
  0x25   : > { %1257 = vmatprep.subr.bf16.mxu0 %v1754_v53  ;;  %1289 = vmatprep.subr.bf16.mxu1 %v1756_v54  ;;  %v363_v46 = vld [vmem:[%s2110_s3 + $0x70] sm:$0xff]  ;;  %v364_v47 = vld [vmem:[%s2110_s3 + $0x78] sm:$0xff]  ;;  %v1902_v48 = vpack.c.bf16 %v412_v45, %v411_v43  ;;  %v201_v0 = vld [vmem:[%s2109_s2] sm:$0xf] }
  0x26   : > { %v1904_v51 = vpack.c.bf16 %v364_v47, %v363_v46  ;;  %v395_v52 = vld [vmem:[%s2110_s3 + $0x170] sm:$0xff]  ;;  %v396_v55 = vld [vmem:[%s2110_s3 + $0x178] sm:$0xff]  ;;  %v246_v4 = vrot.slane %v201_v0, %v245_v60  ;;  %v254_v5 = vrot.slane %v201_v0, %v253_v63  ;;  %v250_v6 = vrot.slane %v201_v0, %v249_v3 }
  0x27   : > { %v1913_v56 = vpack.c.bf16 %v396_v55, %v395_v52 }
  0x28   : > { %1259 = vmatpush3.bf16.msra.mxu0 %v1778_v61  ;;  %1291 = vmatpush3.bf16.msra.mxu1 %v1780_v62 }
  0x29   : > { %1261 = vmatprep.subr.bf16.mxu0 %v1790_v1  ;;  %1293 = vmatprep.subr.bf16.mxu1 %v1792_v2 }
  0x2c   : > { %1263 = vmatpush3.bf16.msra.mxu0 %v1814_v9  ;;  %1295 = vmatpush3.bf16.msra.mxu1 %v1816_v10 }
  0x2d   : > { %1265 = vmatprep.subr.bf16.mxu0 %v1826_v13  ;;  %1297 = vmatprep.subr.bf16.mxu1 %v1828_v14 }
  0x30   : > { %1267 = vmatpush3.bf16.msra.mxu0 %v1850_v26  ;;  %1299 = vmatpush3.bf16.msra.mxu1 %v1852_v27 }
  0x31   : > { %1269 = vmatprep.subr.bf16.mxu0 %v1856_v28  ;;  %1301 = vmatprep.subr.bf16.mxu1 %v1858_v30 }
  0x34   : > { %1271 = vmatpush3.bf16.msra.mxu0 %v1873_v34  ;;  %1303 = vmatpush3.bf16.msra.mxu1 %v1878_v38 }
  0x35   : > { %1273 = vmatprep.subr.bf16.mxu0 %v1891_v44  ;;  %1305 = vmatprep.subr.bf16.mxu1 %v1902_v48 }
  0x38   : > { %1275 = vmatpush3.bf16.msra.mxu0 %v1904_v51  ;;  %1307 = vmatpush3.bf16.msra.mxu1 %v1913_v56 }
  0x39   : > { %1310 = vmatprep.subr.msk.bf16.mxu0 %vm1920_vm2, %v1640_v15  ;;  %1358 = vmatprep.subr.msk.bf16.mxu1 %vm1920_vm2, %v1642_v16  ;;  %v257_v15 = vsub.s32 3, %v1931_v59 }
  0x3b   : > { %v258_v16 = vrot.slane %v201_v0, %v257_v15 }
  0xee   : > { %v301_v7 = vpop.f32.mrb[0].mxu0  ;;  %v342_v8 = vpop.f32.mrb[0].mxu1 }
  0xef   : > { %v1940_v11 = vadd.f32 %v301_v7, %v246_v4  ;;  %v1942_v12 = vadd.f32 %v342_v8, %v254_v5  ;;  %v303_v17 = vpop.f32.mrb[1].mxu0  ;;  %v344_v18 = vpop.f32.mrb[1].mxu1 }
  0xf0   : > { %v1944_v19 = vadd.f32 %v303_v17, %v250_v6  ;;  %v1946_v21 = vadd.f32 %v344_v18, %v258_v16  ;;  %v305_v22 = vpop.f32.mrb[2].mxu0  ;;  %v346_v23 = vpop.f32.mrb[2].mxu1 }
  0xf1   : > { %v306_v31 = vpop.f32.mrb[3].mxu0  ;;  %v347_v32 = vpop.f32.mrb[3].mxu1  ;;  %v413_v39 = vmul.f32 %v1940_v11, %v1940_v11  ;;  %v415_v40 = vmul.f32 %v1942_v12, %v1942_v12 }
  0xf2   : > { %v414_v33 = vmul.f32 %v1944_v19, %v1944_v19  ;;  %v416_v35 = vmul.f32 %v1946_v21, %v1946_v21 }
  0xf4   : > { %481 = vmatprep.mubr.f32.mxu0 %v414_v33  ;;  %551 = vmatprep.mubr.f32.mxu1 %v416_v35 }
  0xf5   : > { %482 = vmatmul.mubr.f32.vlgmr.msra.gmra.mrb[4].mxu0 %v413_v39  ;;  %552 = vmatmul.mubr.f32.vlgmr.msra.gmra.mrb[4].mxu1 %v415_v40 }
  0xf6   : > { %1313 = vmatpush3.bf16.xpose.msk.msra.mxu0 %vm1920_vm2, %v1653_v20  ;;  %1361 = vmatpush3.bf16.xpose.msk.msra.mxu1 %vm1920_vm2, %v1666_v24 }
  0xf7   : > { %1316 = vmatprep.subr.msk.bf16.mxu0 %vm1920_vm2, %v1668_v25  ;;  %1364 = vmatprep.subr.msk.bf16.mxu1 %vm1920_vm2, %v1679_v29 }
  0xfe   : > { %1319 = vmatpush3.bf16.xpose.msk.msra.mxu0 %vm1920_vm2, %v1703_v36  ;;  %1367 = vmatpush3.bf16.xpose.msk.msra.mxu1 %vm1920_vm2, %v1705_v37 }
  0xff   : > { %1322 = vmatprep.subr.msk.bf16.mxu0 %vm1920_vm2, %v1718_v41  ;;  %1370 = vmatprep.subr.msk.bf16.mxu1 %vm1920_vm2, %v1720_v42 }
 0x106   : > { %1325 = vmatpush3.bf16.xpose.msk.msra.mxu0 %vm1920_vm2, %v1742_v49  ;;  %1373 = vmatpush3.bf16.xpose.msk.msra.mxu1 %vm1920_vm2, %v1744_v50 }
 0x107   : > { %1328 = vmatprep.subr.msk.bf16.mxu0 %vm1920_vm2, %v1754_v53  ;;  %1376 = vmatprep.subr.msk.bf16.mxu1 %vm1920_vm2, %v1756_v54  ;;  %v1524_v53 = vmov 1966171168  }
 0x108   : > { %v921_v54 = vunpack.c.l.s4 %v1524_v53 }
 0x10e   : > { %1331 = vmatpush3.bf16.xpose.msk.msra.mxu0 %vm1920_vm2, %v1778_v61  ;;  %1379 = vmatpush3.bf16.xpose.msk.msra.mxu1 %vm1920_vm2, %v1780_v62 }
 0x10f   : > { %1334 = vmatprep.subr.msk.bf16.mxu0 %vm1920_vm2, %v1790_v1  ;;  %1382 = vmatprep.subr.msk.bf16.mxu1 %vm1920_vm2, %v1792_v2 }
 0x116   : > { %1337 = vmatpush3.bf16.xpose.msk.msra.mxu0 %vm1920_vm2, %v1814_v9  ;;  %1385 = vmatpush3.bf16.xpose.msk.msra.mxu1 %vm1920_vm2, %v1816_v10  ;;  %v922_v10 = vunpack.c.0.s8 %v921_v54 }
 0x117   : > { %1340 = vmatprep.subr.msk.bf16.mxu0 %vm1920_vm2, %v1826_v13  ;;  %1388 = vmatprep.subr.msk.bf16.mxu1 %vm1920_vm2, %v1828_v14 }
 0x11e   : > { %1343 = vmatpush3.bf16.xpose.msk.msra.mxu0 %vm1920_vm2, %v1850_v26  ;;  %1391 = vmatpush3.bf16.xpose.msk.msra.mxu1 %vm1920_vm2, %v1852_v27 }
 0x11f   : > { %1346 = vmatprep.subr.msk.bf16.mxu0 %vm1920_vm2, %v1856_v28  ;;  %1394 = vmatprep.subr.msk.bf16.mxu1 %vm1920_vm2, %v1858_v30 }
 0x126   : > { %1349 = vmatpush3.bf16.xpose.msk.msra.mxu0 %vm1920_vm2, %v1873_v34  ;;  %1397 = vmatpush3.bf16.xpose.msk.msra.mxu1 %vm1920_vm2, %v1878_v38 }
 0x127   : > { %1352 = vmatprep.subr.msk.bf16.mxu0 %vm1920_vm2, %v1891_v44  ;;  %1400 = vmatprep.subr.msk.bf16.mxu1 %vm1920_vm2, %v1902_v48  ;;  %v925_v44 = vsub.s32 %v922_v10, %v1931_v59 }
 0x12e   : > { %1355 = vmatpush3.bf16.xpose.msk.msra.mxu0 %vm1920_vm2, %v1904_v51  ;;  %1403 = vmatpush3.bf16.xpose.msk.msra.mxu1 %vm1920_vm2, %v1913_v56 }
 0x1c8   : > { %v1138_v20 = vpop.f32.mrb[4].mxu0  ;;  %v1173_v24 = vpop.f32.mrb[4].mxu1 }
 0x1c9   : > { %v1139_v25 = vpop.f32.mrb[5].mxu0  ;;  %v1174_v29 = vpop.f32.mrb[5].mxu1 }
 0x1ca   : > { %v1140_v36 = vadd.f32 %v1139_v25, %v1138_v20  ;;  %v1175_v37 = vadd.f32 %v1174_v29, %v1173_v24 }
 0x1cc   : > { %v554_v41 = vadd.f32 %v1175_v37, %v1140_v36 }
 0x1ce   : > { %v557_v42 = vmul.f32 0.03125, %v554_v41 }
 0x1d0   : > { %v558_v49 = vadd.f32 1e-08, %v557_v42 }
 0x1d2   : > { %1457 = vrsqrt.f32 %v558_v49 }
 0x1dc   : > { %v1458_v50 = vpop.eup %1457 }
 0x1dd   : > { %1208 = vmatprep.mubr.msk.f32.mxu0 %vm560_vm1, %v1458_v50  ;;  %1242 = vmatprep.mubr.msk.f32.mxu1 %vm560_vm1, %v1458_v50 }
 0x1de   : > { %1209 = vmatmul.mubr.msk.f32.vlgmr.msra.gmra.mrb[6].mxu0 %vm560_vm1, %v1458_v50  ;;  %1243 = vmatmul.mubr.msk.f32.vlgmr.msra.gmra.mrb[6].mxu1 %vm560_vm1, %v1458_v50 }
 0x2b1   : > { %v822_v61 = vpop.f32.mrb[6].mxu0  ;;  %v893_v62 = vpop.f32.mrb[6].mxu1 }
 0x2b2   : > { %v898_v1 = vmul.f32 %v822_v61, %v1940_v11  ;;  %v900_v2 = vmul.f32 %v893_v62, %v1942_v12  ;;  %v824_v9 = vpop.f32.mrb[7].mxu0  ;;  %v895_v13 = vpop.f32.mrb[7].mxu1 }
 0x2b3   : > { %v899_v14 = vmul.f32 %v824_v9, %v1944_v19  ;;  %v901_v26 = vmul.f32 %v895_v13, %v1946_v21 }
 0x2b4   : > { %vm902_vm3 = vcmp.ge.f32.partialorder %v898_v1, 0.0  ;;  %v906_v27 = vmul.f32 0.2, %v898_v1  ;;  %vm904_vm4 = vcmp.ge.f32.partialorder %v900_v2, 0.0  ;;  %v908_v28 = vmul.f32 0.2, %v900_v2 }
 0x2b5   : > { %vm903_vm5 = vcmp.ge.f32.partialorder %v899_v14, 0.0  ;;  %v907_v30 = vmul.f32 0.2, %v899_v14  ;;  %vm905_vm6 = vcmp.ge.f32.partialorder %v901_v26, 0.0  ;;  %v909_v34 = vmul.f32 0.2, %v901_v26 }
 0x2b6   : > { %v910_v38 = vsel %vm902_vm3, %v898_v1, %v906_v27  ;;  %v912_v43 = vsel %vm904_vm4, %v900_v2, %v908_v28 }
 0x2b7   : > { %v911_v45 = vsel %vm903_vm5, %v899_v14, %v907_v30  ;;  %v913_v46 = vsel %vm905_vm6, %v901_v26, %v909_v34 }
 0x2b8   : > { %v918_v47 = vcombine.low %v910_v38, %v911_v45  ;;  %v919_v48 = vcombine.low %v912_v43, %v913_v46 }
 0x2ba   : > { %v926_v51 = vrot.slane %v918_v47, %v925_v44  ;;  %v933_v52 = vrot.slane %v919_v48, %v925_v44 }
 0x2bc   : > { %v934_v55 = vcombine.low %v926_v51, %v933_v52 }
 0x2be   : > { %v941_v56 = vrot.slane %v934_v55, %v925_v44 }
 0x2c0   : > { %947 = vst.msk [vmem:[%s186_s27] sm:$0xf] %vm945_vm7, %v941_v56 }
 0x2c1   : > { %1472 = shalt.err (!%p1469_p3)
}
 0x2c2   : > { %s1473_s9 = scalar_lea.hbm %s2063_s5, 64  ;;  %s1477_s13 = scalar_lea.hbm %s2111_s4, 128 }
 0x2c3   : > { %p1474_p4 = scmp.ne.s32.totalorder %s2063_s5, %s1473_s9  ;;  %p1478_p9 = scmp.lt.u32.totalorder %s2063_s5, %s2111_s4 }
 0x2c4   : > { %p1479_p10 = scmp.lt.u32.totalorder %s1477_s13, %s1473_s9  ;;  %p1481_p12 = scmp.lt.u32.totalorder %s1473_s9, %s2063_s5 }
 0x2c5   : > { %p1475_p7 = pnand %p1474_p4, %p1589_p5 }
 0x2c6   : > { %p1480_p11 = por %p1479_p10, %p1478_p9 }
 0x2c7   : > { %p1476_p8 = pneg %p1475_p7 }
 0x2c8   : > { %p1482_p13 = por %p1481_p12, %p1480_p11 }
 0x2ca   : > { %p1483_p0 = pnand %p1482_p13, %p1476_p8 }
 0x2cc   : > { %1486 = shalt.err (!%p1483_p0)
}
 0x2cd   : > { %1404 = dma.vmem_to_hbm [thread:$0]  (%p1589_p5), %s2065_s28, 64, %s2063_s5, %s949_s6  }
 0x2ce PF: > { %p1410_p1 = scmp.ge.s32.totalorder %s1521_s18, 2  ;;  %s975_s22 = sand.u32 1, %s1509_s15  }
 0x2cf   : > { %s976_s23 = scalar_lea.sflag [#allocation3], %s975_s22 }
 0x2d0   : > { %p1407_p2 = pnand %p1410_p1, %p1593_p6 }
 0x2d2   : > { %1504 = dma.done.wait (!%p1407_p2), %s976_s23, 64  }
 0x2d3   : > { %1506 = vsyncadd (!%p1407_p2), %s976_s23, 4294967232  ;;  %p14_p3 = scmp.ge.s32.totalorder %s1576_s21, 4   ;;  %s2116_s15 = smov %s1513_s16 }
 0x2d4   : > { %s2117_s16 = smov %s1517_s17  ;;  %s2118_s17 = smov %s1587_s24 }
 0x2d5   : > { %s2119_s18 = smov %s1576_s21  ;;  %16 = sbr.rel (!%p14_p3) target bundleno = 3 (0x3), region = 71 }
 0x2dc   :  { %981 = vsyncpa [#allocation3], 1 }
 0x2dd   :  { %983 = vsyncpa [#allocation3 + $0x1], 1 }

</bundles_post_ra>
